<compile_context>
chip_gen: v5e
topology: v5e:2x2
jax: 0.10.0
libtpu: 0.0.40
codegen_flags: <defaults>
</compile_context>

<pallas_src>
import jax
import jax.numpy as jnp
from jax.experimental import pallas as pl
from jax.experimental.pallas import tpu as pltpu


def _round_up(x, m):
    return ((x + m - 1) // m) * m


def _detect_num_tensorcores():
    """2 for chips whose 'parallel' grid axes shard across two TensorCores."""
    try:
        kind = jax.devices()[0].device_kind.lower()
    except Exception:
        return 1
    return 2 if any(tag in kind for tag in ("v4", "v5p", "v7")) else 1


_NUM_TENSORCORES = _detect_num_tensorcores()


def _buffered_supported():
    """pipeline_mode=pl.Buffered(1) availability check (single-buffered weights)."""
    if not hasattr(pl, "Buffered"):
        return False
    try:
        pl.BlockSpec((8, 128), lambda i: (0, 0), pipeline_mode=pl.Buffered(1))
    except Exception:
        return False
    return True


_BUFFERED_OK = _buffered_supported()


# ----------------------------------------------------------------------------
# Kernel
# ----------------------------------------------------------------------------
def _make_kernel(hidden_dim, split_l2, transpose_out, compute_dtype):
    """Build the fused twin-Q kernel for a given static configuration."""
    H = hidden_dim

    def _layer1(s_ref, a_ref, w1s_ref, w1a_ref, b1_ref):
        # Concat-free layer 1: [Bt,S]@[S,2H] + [Bt,A]@[A,2H] + b -> relu -> bf16
        h = (jnp.dot(s_ref[...], w1s_ref[...], preferred_element_type=jnp.float32)
             + jnp.dot(a_ref[...], w1a_ref[...], preferred_element_type=jnp.float32)
             + b1_ref[...])
        return jnp.maximum(h, 0.0).astype(compute_dtype)

    def _store(q_ref, q):
        # Lane-dense transposed store ([2, Bt]) when the out block is aligned,
        # otherwise the narrow [Bt, 2] store.
        q_ref[...] = q.T if transpose_out else q

    if split_l2:
        # Zero-free layer 2: two [H,H] matmuls on lane-aligned slices (H%128==0).
        def kernel(s_ref, a_ref, w1s_ref, w1a_ref, b1_ref,
                   w2a_ref, w2b_ref, b2_ref, w3_ref, b3_ref, q_ref):
            h = _layer1(s_ref, a_ref, w1s_ref, w1a_ref, b1_ref)
            h1 = jnp.dot(h[:, :H], w2a_ref[...], preferred_element_type=jnp.float32)
            h2 = jnp.dot(h[:, H:], w2b_ref[...], preferred_element_type=jnp.float32)
            g = jnp.concatenate([h1, h2], axis=1) + b2_ref[...]
            g = jnp.maximum(g, 0.0).astype(compute_dtype)
            q = jnp.dot(g, w3_ref[...], preferred_element_type=jnp.float32) + b3_ref[...]
            _store(q_ref, q)
    else:
        # Small H: keep block-diagonal [2H,2H] (one wide MXU pass).
        def kernel(s_ref, a_ref, w1s_ref, w1a_ref, b1_ref,
                   w2_ref, b2_ref, w3_ref, b3_ref, q_ref):
            h = _layer1(s_ref, a_ref, w1s_ref, w1a_ref, b1_ref)
            g = jnp.dot(h, w2_ref[...], preferred_element_type=jnp.float32) + b2_ref[...]
            g = jnp.maximum(g, 0.0).astype(compute_dtype)
            q = jnp.dot(g, w3_ref[...], preferred_element_type=jnp.float32) + b3_ref[...]
            _store(q_ref, q)

    return kernel


# ----------------------------------------------------------------------------
# Parameter fusion (forward-only; never train the fused tensors directly, or
# gradients would flow into the zero off-diagonal blocks and couple the heads).
# ----------------------------------------------------------------------------
def fuse_params(params, state_dim, dtype=jnp.bfloat16):
    """Fuse the 12 per-layer tensors into the kernel inputs (done once, off the hot path).

    Weights stored in `dtype` (bf16 by default) for half the DMA/VMEM and bf16
    MXU throughput; biases stay f32 (added to the f32 MXU accumulator).
    """
    (w1, b1, w2, b2, w3, b3, w4, b4, w5, b5, w6, b6) = params
    H = w1.shape[1]
    f32 = jnp.float32

    w1f = jnp.concatenate([w1, w4], axis=1)                   # [S+A, 2H]
    w1_s = w1f[:state_dim].astype(dtype)                      # [S, 2H]
    w1_a = w1f[state_dim:].astype(dtype)                      # [A, 2H]
    b1f = jnp.concatenate([b1, b4], axis=1).astype(f32)       # [1, 2H]

    if H % 128 == 0:
        # Zero-free split layer 2 (lane-aligned slices inside the kernel).
        l2_weights = (w2.astype(dtype), w5.astype(dtype))     # 2 x [H, H]
    else:
        zhh = jnp.zeros((H, H), f32)
        l2_weights = (jnp.block([[w2, zhh], [zhh, w5]]).astype(dtype),)  # [2H, 2H]
    b2f = jnp.concatenate([b2, b5], axis=1).astype(f32)       # [1, 2H]

    zh1 = jnp.zeros((H, 1), f32)
    w3f = jnp.block([[w3, zh1], [zh1, w6]]).astype(dtype)     # [2H, 2] block-diag
    b3f = jnp.concatenate([b3, b6], axis=1).astype(f32)       # [1, 2]

    return (w1_s, w1_a, b1f, l2_weights, b2f, w3f, b3f)


def _vmem_limit(w_bytes_single, b_tile, in_dim, H, compute_dtype, single_buffer):
    """Rough VMEM estimate; only set an explicit limit when the default may not fit."""
    itemsize = jnp.dtype(compute_dtype).itemsize
    w_total = w_bytes_single * (1 if single_buffer else 2)        # weight buffers
    io_total = 2 * b_tile * in_dim * itemsize + 2 * b_tile * 2 * 4  # dbl-buffered I/O
    act_total = 6 * b_tile * 2 * H * 4                            # f32 intermediates
    est = w_total + io_total + act_total + (1 << 20)
    if est <= 12 * (1 << 20):
        return None  # comfortably under every generation's default scoped limit
    return int(min(est, 100 * (1 << 20)))


# ----------------------------------------------------------------------------
# Wrapper
# ----------------------------------------------------------------------------
def sac_q_value_net(state, action, fused_params, max_batch_tile=1024):
    """Pallas forward. state: [B, S], action: [B, A] -> (q1 [B,1], q2 [B,1])."""
    (w1_s, w1_a, b1f, l2_weights, b2f, w3f, b3f) = fused_params
    split_l2 = len(l2_weights) == 2
    compute_dtype = w1_s.dtype
    B, S = state.shape
    A = action.shape[1]
    H = b2f.shape[1] // 2

    # Cast activations to the weight storage dtype (bf16): halves input DMA and
    # enables bf16 MXU passes; accumulation stays f32 inside the kernel.
    state = state.astype(compute_dtype)
    action = action.astype(compute_dtype)

    # --- Balanced batch tiling ---------------------------------------------
    n_tiles = pl.cdiv(B, max_batch_tile)
    if B >= 256:
        # Make sure both TensorCores get work on megacore/v7x chips.
        n_tiles = max(n_tiles, _NUM_TENSORCORES)
    b_tile = _round_up(max(pl.cdiv(B, n_tiles), 8), 8)
    b_pad = n_tiles * b_tile
    if b_pad != B:
        pad = b_pad - B
        state = jnp.pad(state, ((0, pad), (0, 0)))
        action = jnp.pad(action, ((0, pad), (0, 0)))

    # Lane-dense transposed output only when the out block is aligned.
    transpose_out = (n_tiles == 1) or (b_tile % 128 == 0)

    kernel = _make_kernel(H, split_l2, transpose_out, compute_dtype)

    weight_args = (w1_s, w1_a, b1f) + tuple(l2_weights) + (b2f, w3f, b3f)
    w_bytes = sum(int(w.size) * w.dtype.itemsize for w in weight_args)
    # Single-buffer grid-invariant weights once double-buffering them would
    # meaningfully eat VMEM (large H).
    single_buffer = _BUFFERED_OK and w_bytes > (1 << 20)

    def batch_spec(d):
        return pl.BlockSpec((b_tile, d), lambda i: (i, 0))

    def weight_spec(w):
        if single_buffer:
            return pl.BlockSpec(w.shape, lambda i: (0, 0),
                                pipeline_mode=pl.Buffered(1))
        return pl.BlockSpec(w.shape, lambda i: (0, 0))

    if transpose_out:
        out_shape = jax.ShapeDtypeStruct((2, b_pad), jnp.float32)
        out_spec = pl.BlockSpec((2, b_tile), lambda i: (0, i))
    else:
        out_shape = jax.ShapeDtypeStruct((b_pad, 2), jnp.float32)
        out_spec = pl.BlockSpec((b_tile, 2), lambda i: (i, 0))

    q = pl.pallas_call(
        kernel,
        out_shape=out_shape,
        grid=(n_tiles,),
        in_specs=[batch_spec(S), batch_spec(A)] + [weight_spec(w) for w in weight_args],
        out_specs=out_spec,
        compiler_params=pltpu.CompilerParams(
            dimension_semantics=("parallel",),
            vmem_limit_bytes=_vmem_limit(w_bytes, b_tile, S + A, H,
                                         compute_dtype, single_buffer)),
    )(state, action, *weight_args)

    if transpose_out:
        q1 = q[0, :B][:, None]
        q2 = q[1, :B][:, None]
    else:
        q1 = q[:B, 0:1]
        q2 = q[:B, 1:2]
    return q1, q2


# ----------------------------------------------------------------------------
# Init + reference
# ----------------------------------------------------------------------------
def init_params(key, state_dim, hidden_dim, action_dim):
    """nn.Linear-style init (uniform +-1/sqrt(fan_in)); weights [in,out], biases [1,out]."""
    in_dim = state_dim + action_dim
    dims = [
        (in_dim, hidden_dim), (hidden_dim, hidden_dim), (hidden_dim, 1),   # q1
        (in_dim, hidden_dim), (hidden_dim, hidden_dim), (hidden_dim, 1),   # q2
    ]
    params = []
    keys = jax.random.split(key, len(dims) * 2)
    for i, (fan_in, fan_out) in enumerate(dims):
        bound = 1.0 / (fan_in ** 0.5)
        w = jax.random.uniform(keys[2 * i], (fan_in, fan_out),
                               minval=-bound, maxval=bound, dtype=jnp.float32)
        b = jax.random.uniform(keys[2 * i + 1], (1, fan_out),
                               minval=-bound, maxval=bound, dtype=jnp.float32)
        params.append(w)
        params.append(b)
    return tuple(params)


def reference_forward(state, action, params):
    """Pure-JAX f32 reference matching the PyTorch forward semantics (unfused)."""
    (w1, b1, w2, b2, w3, b3, w4, b4, w5, b5, w6, b6) = params
    sa = jnp.concatenate([state, action], axis=1)
    q1 = jnp.maximum(sa @ w1 + b1, 0.0)
    q1 = jnp.maximum(q1 @ w2 + b2, 0.0)
    q1 = q1 @ w3 + b3
    q2 = jnp.maximum(sa @ w4 + b4, 0.0)
    q2 = jnp.maximum(q2 @ w5 + b5, 0.0)
    q2 = q2 @ w6 + b6
    return q1, q2


# ----------------------------------------------------------------------------
# Self-test
# ----------------------------------------------------------------------------
if __name__ == "__main__":
    def run_case(state_dim, hidden_dim, action_dim, batch, key, max_batch_tile=1024):
        ks, ka, kp = jax.random.split(key, 3)
        state = jax.random.normal(ks, (batch, state_dim), dtype=jnp.float32)
        action = jax.random.normal(ka, (batch, action_dim), dtype=jnp.float32)
        params = init_params(kp, state_dim, hidden_dim, action_dim)
        fused = fuse_params(params, state_dim)  # bf16 storage, f32 accumulation
        q_fn = jax.jit(sac_q_value_net, static_argnames=("max_batch_tile",))
        q1, q2 = q_fn(state, action, fused, max_batch_tile=max_batch_tile)
        jax.block_until_ready((q1, q2))
        q1_ref, q2_ref = reference_forward(state, action, params)
        assert q1.shape == (batch, 1) and q2.shape == (batch, 1)
        # Loosened tolerance: bf16 weight/activation storage (f32 accumulation).
        assert jnp.allclose(q1, q1_ref, atol=5e-2, rtol=5e-2), \
            f"q1 mismatch, max err {jnp.max(jnp.abs(q1 - q1_ref))}"
        assert jnp.allclose(q2, q2_ref, atol=5e-2, rtol=5e-2), \
            f"q2 mismatch, max err {jnp.max(jnp.abs(q2 - q2_ref))}"

    key = jax.random.PRNGKey(0)
    k1, k2, k3 = jax.random.split(key, 3)

    # Toy module shapes: fused block-diag layer 2, single tile, transposed output.
    run_case(state_dim=16, hidden_dim=32, action_dim=8, batch=4, key=k1)
    # H multiple of 128 -> exercises the zero-free split layer-2 path.
    run_case(state_dim=16, hidden_dim=128, action_dim=8, batch=6, key=k2)
    # Forced multi-tile grid -> exercises the "parallel" batch axis and the
    # narrow-output fallback path.
    run_case(state_dim=16, hidden_dim=32, action_dim=8, batch=20, key=k3,
             max_batch_tile=8)

    print("KERNEL_OK")
</pallas_src>

<mosaic_0001>
module attributes {stable_mosaic.version = 11 : i64} {
  func.func @kernel(%arg0: i32, %arg1: memref<8x16xbf16, #tpu.memory_space<vmem>>, %arg2: memref<8x8xbf16, #tpu.memory_space<vmem>>, %arg3: memref<16x64xbf16, #tpu.memory_space<vmem>>, %arg4: memref<8x64xbf16, #tpu.memory_space<vmem>>, %arg5: memref<1x64xf32, #tpu.memory_space<vmem>>, %arg6: memref<64x64xbf16, #tpu.memory_space<vmem>>, %arg7: memref<1x64xf32, #tpu.memory_space<vmem>>, %arg8: memref<64x2xbf16, #tpu.memory_space<vmem>>, %arg9: memref<1x2xf32, #tpu.memory_space<vmem>>, %arg10: memref<2x8xf32, #tpu.memory_space<vmem>>) attributes {dimension_semantics = [#tpu.dimension_semantics<parallel>], iteration_bounds = array<i64: 1>, scalar_prefetch = 0 : i64, scratch_operands = 0 : i64, tpu.core_type = #tpu.core_type<tc>, window_params = [{transform_indices = @transform_0, window_bounds = array<i64: 8, 16>}, {transform_indices = @transform_1, window_bounds = array<i64: 8, 8>}, {pipeline_mode = #tpu.pipeline_mode<synchronous>, transform_indices = @transform_2, window_bounds = array<i64: 16, 64>}, {pipeline_mode = #tpu.pipeline_mode<synchronous>, transform_indices = @transform_3, window_bounds = array<i64: 8, 64>}, {pipeline_mode = #tpu.pipeline_mode<synchronous>, transform_indices = @transform_4, window_bounds = array<i64: 1, 64>}, {pipeline_mode = #tpu.pipeline_mode<synchronous>, transform_indices = @transform_5, window_bounds = array<i64: 64, 64>}, {pipeline_mode = #tpu.pipeline_mode<synchronous>, transform_indices = @transform_6, window_bounds = array<i64: 1, 64>}, {pipeline_mode = #tpu.pipeline_mode<synchronous>, transform_indices = @transform_7, window_bounds = array<i64: 64, 2>}, {pipeline_mode = #tpu.pipeline_mode<synchronous>, transform_indices = @transform_8, window_bounds = array<i64: 1, 2>}, {transform_indices = @transform_9, window_bounds = array<i64: 2, 8>}]} {
    %c0 = arith.constant 0 : index
    %c0_0 = arith.constant 0 : index
    %0 = vector.load %arg1[%c0, %c0_0] : memref<8x16xbf16, #tpu.memory_space<vmem>>, vector<8x16xbf16>
    %c0_1 = arith.constant 0 : index
    %c0_2 = arith.constant 0 : index
    %1 = vector.load %arg3[%c0_1, %c0_2] : memref<16x64xbf16, #tpu.memory_space<vmem>>, vector<16x64xbf16>
    %cst = arith.constant dense<0.000000e+00> : vector<8x64xf32>
    %2 = tpu.matmul %0, %1, %cst {dimension_numbers = #tpu.dot_dimension_numbers<[1], [0], [0], [1], [0, 0, 1, 1], [], []>} : vector<8x16xbf16>, vector<16x64xbf16>, vector<8x64xf32> -> vector<8x64xf32>
    %c0_3 = arith.constant 0 : index
    %c0_4 = arith.constant 0 : index
    %3 = vector.load %arg2[%c0_3, %c0_4] : memref<8x8xbf16, #tpu.memory_space<vmem>>, vector<8x8xbf16>
    %c0_5 = arith.constant 0 : index
    %c0_6 = arith.constant 0 : index
    %4 = vector.load %arg4[%c0_5, %c0_6] : memref<8x64xbf16, #tpu.memory_space<vmem>>, vector<8x64xbf16>
    %cst_7 = arith.constant dense<0.000000e+00> : vector<8x64xf32>
    %5 = tpu.matmul %3, %4, %cst_7 {dimension_numbers = #tpu.dot_dimension_numbers<[1], [0], [0], [1], [0, 0, 1, 1], [], []>} : vector<8x8xbf16>, vector<8x64xbf16>, vector<8x64xf32> -> vector<8x64xf32>
    %6 = arith.addf %2, %5 : vector<8x64xf32>
    %c0_8 = arith.constant 0 : index
    %c0_9 = arith.constant 0 : index
    %7 = vector.load %arg5[%c0_8, %c0_9] : memref<1x64xf32, #tpu.memory_space<vmem>>, vector<1x64xf32>
    %8 = vector.broadcast %7 : vector<1x64xf32> to vector<8x64xf32>
    %9 = arith.addf %6, %8 : vector<8x64xf32>
    %cst_10 = arith.constant 0.000000e+00 : f32
    %10 = vector.broadcast %cst_10 : f32 to vector<8x64xf32>
    %11 = arith.maximumf %9, %10 : vector<8x64xf32>
    %12 = arith.truncf %11 : vector<8x64xf32> to vector<8x64xbf16>
    %c0_11 = arith.constant 0 : index
    %c0_12 = arith.constant 0 : index
    %13 = vector.load %arg6[%c0_11, %c0_12] : memref<64x64xbf16, #tpu.memory_space<vmem>>, vector<64x64xbf16>
    %cst_13 = arith.constant dense<0.000000e+00> : vector<8x64xf32>
    %14 = tpu.matmul %12, %13, %cst_13 {dimension_numbers = #tpu.dot_dimension_numbers<[1], [0], [0], [1], [0, 0, 1, 1], [], []>} : vector<8x64xbf16>, vector<64x64xbf16>, vector<8x64xf32> -> vector<8x64xf32>
    %c0_14 = arith.constant 0 : index
    %c0_15 = arith.constant 0 : index
    %15 = vector.load %arg7[%c0_14, %c0_15] : memref<1x64xf32, #tpu.memory_space<vmem>>, vector<1x64xf32>
    %16 = vector.broadcast %15 : vector<1x64xf32> to vector<8x64xf32>
    %17 = arith.addf %14, %16 : vector<8x64xf32>
    %cst_16 = arith.constant 0.000000e+00 : f32
    %18 = vector.broadcast %cst_16 : f32 to vector<8x64xf32>
    %19 = arith.maximumf %17, %18 : vector<8x64xf32>
    %20 = arith.truncf %19 : vector<8x64xf32> to vector<8x64xbf16>
    %c0_17 = arith.constant 0 : index
    %c0_18 = arith.constant 0 : index
    %21 = vector.load %arg8[%c0_17, %c0_18] : memref<64x2xbf16, #tpu.memory_space<vmem>>, vector<64x2xbf16>
    %cst_19 = arith.constant dense<0.000000e+00> : vector<8x2xf32>
    %22 = tpu.matmul %20, %21, %cst_19 {dimension_numbers = #tpu.dot_dimension_numbers<[1], [0], [0], [1], [0, 0, 1, 1], [], []>} : vector<8x64xbf16>, vector<64x2xbf16>, vector<8x2xf32> -> vector<8x2xf32>
    %c0_20 = arith.constant 0 : index
    %c0_21 = arith.constant 0 : index
    %23 = vector.load %arg9[%c0_20, %c0_21] : memref<1x2xf32, #tpu.memory_space<vmem>>, vector<1x2xf32>
    %24 = vector.broadcast %23 : vector<1x2xf32> to vector<8x2xf32>
    %25 = arith.addf %22, %24 : vector<8x2xf32>
    %26 = tpu.transpose %25, [1, 0] : vector<8x2xf32> -> vector<2x8xf32>
    %c0_22 = arith.constant 0 : index
    %c0_23 = arith.constant 0 : index
    %27 = vector.load %arg10[%c0_22, %c0_23] : memref<2x8xf32, #tpu.memory_space<vmem>>, vector<2x8xf32>
    tpu.vector_store %arg10[%c0_22, %c0_23], %26 {strides = array<i32>} : memref<2x8xf32, #tpu.memory_space<vmem>>, vector<2x8xf32>,
    return
  }
  func.func @transform_0(%arg0: i32) -> (i32, i32) {
    %c0_i32 = arith.constant 0 : i32
    %c0_i32_0 = arith.constant 0 : i32
    return %arg0, %c0_i32 : i32, i32
  }
  func.func @transform_1(%arg0: i32) -> (i32, i32) {
    %c0_i32 = arith.constant 0 : i32
    %c0_i32_0 = arith.constant 0 : i32
    return %arg0, %c0_i32 : i32, i32
  }
  func.func @transform_2(%arg0: i32) -> (i32, i32) {
    %c0_i32 = arith.constant 0 : i32
    %c0_i32_0 = arith.constant 0 : i32
    %c0_i32_1 = arith.constant 0 : i32
    return %c0_i32, %c0_i32_0 : i32, i32
  }
  func.func @transform_3(%arg0: i32) -> (i32, i32) {
    %c0_i32 = arith.constant 0 : i32
    %c0_i32_0 = arith.constant 0 : i32
    %c0_i32_1 = arith.constant 0 : i32
    return %c0_i32, %c0_i32_0 : i32, i32
  }
  func.func @transform_4(%arg0: i32) -> (i32, i32) {
    %c0_i32 = arith.constant 0 : i32
    %c0_i32_0 = arith.constant 0 : i32
    %c0_i32_1 = arith.constant 0 : i32
    return %c0_i32, %c0_i32_0 : i32, i32
  }
  func.func @transform_5(%arg0: i32) -> (i32, i32) {
    %c0_i32 = arith.constant 0 : i32
    %c0_i32_0 = arith.constant 0 : i32
    %c0_i32_1 = arith.constant 0 : i32
    return %c0_i32, %c0_i32_0 : i32, i32
  }
  func.func @transform_6(%arg0: i32) -> (i32, i32) {
    %c0_i32 = arith.constant 0 : i32
    %c0_i32_0 = arith.constant 0 : i32
    %c0_i32_1 = arith.constant 0 : i32
    return %c0_i32, %c0_i32_0 : i32, i32
  }
  func.func @transform_7(%arg0: i32) -> (i32, i32) {
    %c0_i32 = arith.constant 0 : i32
    %c0_i32_0 = arith.constant 0 : i32
    %c0_i32_1 = arith.constant 0 : i32
    return %c0_i32, %c0_i32_0 : i32, i32
  }
  func.func @transform_8(%arg0: i32) -> (i32, i32) {
    %c0_i32 = arith.constant 0 : i32
    %c0_i32_0 = arith.constant 0 : i32
    %c0_i32_1 = arith.constant 0 : i32
    return %c0_i32, %c0_i32_0 : i32, i32
  }
  func.func @transform_9(%arg0: i32) -> (i32, i32) {
    %c0_i32 = arith.constant 0 : i32
    %c0_i32_0 = arith.constant 0 : i32
    return %c0_i32, %arg0 : i32, i32
  }
}

</mosaic_0001>

<bundles_post_ra>
// kernel: sac_q_value_net.1
= control target key start
LH: loop header
LB: loop body
LE: loop exit
PB: predicated region body
PF: predicated region fallthrough
CT: control target
= control target key end

     0   :  { %vm42_vm0 = vcmask 1043456   ;;  %vm38_vm1 = vcmask 64512   ;;  %vm65_vm2 = vcmask 130048   ;;  %vm125_vm3 = vcmask 523264   ;;  %s385_s3 = inlined_call_operand.vmem [shape: bf16[8,64], index: 3, kind: input, shape index: {}]   ;;  %s386_s2 = inlined_call_operand.vmem [shape: bf16[16,64], index: 2, kind: input, shape index: {}]   ;;  %s387_s1 = inlined_call_operand.vmem [shape: bf16[8,8], index: 1, kind: input, shape index: {}]   ;;  %s388_s0 = inlined_call_operand.vmem [shape: bf16[8,16], index: 0, kind: input, shape index: {}]   ;;  %s389_s5 = inlined_call_operand.vmem [shape: bf16[64,64], index: 5, kind: input, shape index: {}]   ;;  %s390_s4 = inlined_call_operand.vmem [shape: f32[1,64], index: 4, kind: input, shape index: {}]   ;;  %s391_s6 = inlined_call_operand.vmem [shape: f32[1,64], index: 6, kind: input, shape index: {}]   ;;  %s392_s7 = inlined_call_operand.vmem [shape: bf16[64,2], index: 7, kind: input, shape index: {}]   ;;  %s393_s8 = inlined_call_operand.vmem [shape: f32[1,2], index: 8, kind: input, shape index: {}]   ;;  %s394_s9 = inlined_call_operand.vmem [shape: f32[2,8], index: 9, kind: output, shape index: {}]  }
   0x1   :  { %v37_v0 = vld [vmem:[%s385_s3] sm:$0xf]  ;;  %v278_v3 = vld [vmem:[%s389_s5 + $0x18] sm:$0xff]  ;;  %v277_v6 = vld [vmem:[%s389_s5 + $0x10] sm:$0xff]  ;;  %vm228_vm4 = vcmask 58368  }
   0x2   :  { %v274_v1 = vld [vmem:[%s386_s2] sm:$0xff]  ;;  %v44_v2 = vsel %vm42_vm0, %v37_v0, 0  ;;  %133 = vmatpush.bf16.msra.mxu2 %v278_v3  ;;  %v276_v7 = vld [vmem:[%s389_s5 + $0x8] sm:$0xff]  ;;  %v282_v9 = vld [vmem:[%s392_s7 + $0x18] sm:$0xff] }
   0x3   :  { %53 = vmatpush.bf16.msra.mxu0 %v44_v2  ;;  %76 = vmatpush.bf16.msra.mxu1 %v274_v1  ;;  %v36_v4 = vld [vmem:[%s387_s1] sm:$0xf]  ;;  %v281_v10 = vld [vmem:[%s392_s7 + $0x10] sm:$0xff]  ;;  %v280_v20 = vld [vmem:[%s392_s7 + $0x8] sm:$0xff] }
   0x4   :  { %v33_v5 = vld [vmem:[%s388_s0] sm:$0xf]  ;;  %187 = vmatpush.bf16.msra.mxu3 %v282_v9 }
   0x5   :  { %v275_v8 = vld [vmem:[%s389_s5] sm:$0xff] }
   0x6   :  { %234 = vmatmul.msk.bf16.vlgmr.msra.gmra.mxu0 %vm38_vm1, %v36_v4  ;;  %239 = vmatmul.msk.bf16.vlgmr.msra.gmra.mxu1 %vm65_vm2, %v33_v5  ;;  %v284_v11 = vld [vmem:[%s390_s4] ss:$0 sm:$0xff] }
   0x7   :  { %134 = vmatpush.bf16.msra.mxu2 %v277_v6  ;;  %v279_v21 = vld [vmem:[%s392_s7] sm:$0xff] }
   0x8   :  { %188 = vmatpush.bf16.msra.mxu3 %v281_v10  ;;  %v285_v22 = vld [vmem:[%s391_s6] ss:$0 sm:$0xff] }
   0x9   :  { %v286_v28 = vld [vmem:[%s393_s8] ss:$0 sm:$0xff] }
   0xb   :  { %135 = vmatpush.bf16.msra.mxu2 %v276_v7 }
   0xc   :  { %189 = vmatpush.bf16.msra.mxu3 %v280_v20 }
   0xf   :  { %136 = vmatpush.bf16.msra.mxu2 %v275_v8 }
  0x10   :  { %190 = vmatpush.bf16.msra.mxu3 %v279_v21 }
  0x83   :  { %v55_v12 = vpop.f32.mrf.mxu0  ;;  %v78_v13 = vpop.f32.mrf.mxu1 }
  0x84   :  { %v79_v14 = vadd.f32 %v78_v13, %v55_v12 }
  0x86   :  { %v86_v15 = vadd.f32 %v284_v11, %v79_v14 }
  0x88   :  { %v87_v16 = vmax.f32 %v86_v15, 0.0 }
  0x8a   :  { %v88_v17 = vpack.c.bf16 %v87_v16, %v87_v16 }
  0x8b   :  { %v57_v18 = vpop.f32.mrf.mxu0  ;;  %v80_v19 = vpop.f32.mrf.mxu1 }
  0x8c   :  { %256 = vmatmul.msk.bf16.vlgmr.msra.gmra.mxu2 %vm125_vm3, %v88_v17 }
 0x10f   :  { %v138_v23 = vpop.f32.mrf.mxu2 }
 0x110   :  { %v139_v24 = vadd.f32 %v285_v22, %v138_v23 }
 0x112   :  { %v142_v25 = vmax.f32 %v139_v24, 0.0 }
 0x114   :  { %v143_v26 = vpack.c.bf16 %v142_v25, %v142_v25 }
 0x116   :  { %273 = vmatmul.msk.bf16.vlgmr.msra.gmra.mxu3 %vm125_vm3, %v143_v26 }
 0x117   :  { %v140_v27 = vpop.f32.mrf.mxu2 }
 0x199   :  { %v192_v29 = vpop.f32.mrf.mxu3 }
 0x19a   :  { %v193_v30 = vadd.f32 %v286_v28, %v192_v29 }
 0x19c   :  { %196 = vxpose.xlu0.b32.start.end [1/1] (short) (narrow) %v193_v30, 8 }
 0x1a1   :  { %v194_v31 = vpop.f32.mrf.mxu3 }
 0x240   :  { %v212_v32 = vpop.trf.xlu0 }
 0x241   :  { %229 = vst.msk [vmem:[%s394_s9] sm:$0x3] %vm228_vm4, %v212_v32 }

</bundles_post_ra>
